<compile_context>
chip_gen: v7x
topology: tpu7x:2x2x1
jax: 0.10.0
libtpu: 0.0.40
codegen_flags: <defaults>
</compile_context>

<pallas_src>
import jax
import jax.numpy as jnp
from jax.experimental import pallas as pl
from jax.experimental.pallas import tpu as pltpu

BN_EPS = 1e-5
LANE = 128
SUBLANE = 8


def _round_up(n, m):
    return ((n + m - 1) // m) * m


def _fc_bn_relu(h, hsum, w, gb, n_inv, need_outsum):
    """fc (no bias) + fused BatchNorm1d(train) + ReLU on full (N, F) VMEM tiles.

    hsum = sum(h, axis=0, keepdims=True); the batch mean of z = h @ w is then
    (hsum @ w) * n_inv (exact: no bias), keeping the mean on the MXU and the
    variance as a single robust (z - mean)^2 reduction.
    """
    hm = h.astype(w.dtype) if h.dtype != w.dtype else h
    sm = hsum.astype(w.dtype) if hsum.dtype != w.dtype else hsum
    z = jnp.dot(hm, w, preferred_element_type=jnp.float32)            # (N, F) MXU
    mean = jnp.dot(sm, w, preferred_element_type=jnp.float32) * n_inv  # (1, F) MXU
    zc = z - mean
    var = jnp.sum(zc * zc, axis=0, keepdims=True) * n_inv              # biased var
    s = gb[0:1, :] * jax.lax.rsqrt(var + BN_EPS)                       # gamma*inv_std
    out = jnp.maximum(zc * s + gb[1:2, :], 0.0)                        # affine + ReLU
    outsum = jnp.sum(out, axis=0, keepdims=True) if need_outsum else None
    return out, outsum


def _build_kernel(N, D_in, H1p, H2p, Dop, r1, r2):
    """Kernel closure over static shapes / packed-buffer offsets."""
    n_inv = 1.0 / N  # logical batch size (no sublane padding of N is done)

    def kernel(x_ref, w_ref, gb_ref, o_ref):
        x = x_ref[...]
        w1 = w_ref[pl.ds(0, D_in), pl.ds(0, H1p)]
        w2 = w_ref[pl.ds(r1, H1p), pl.ds(0, H2p)]
        w3 = w_ref[pl.ds(r1 + r2, H2p), pl.ds(0, Dop)]
        gb1 = gb_ref[:, pl.ds(0, H1p)]
        gb2 = gb_ref[:, pl.ds(H1p, H2p)]
        gb3 = gb_ref[:, pl.ds(H1p + H2p, Dop)]

        xsum = jnp.sum(x, axis=0, keepdims=True)                       # (1, D_in)
        h, hs = _fc_bn_relu(x, xsum, w1, gb1, n_inv, True)
        h, hs = _fc_bn_relu(h, hs, w2, gb2, n_inv, True)
        h, _ = _fc_bn_relu(h, hs, w3, gb3, n_inv, False)
        o_ref[...] = h.astype(o_ref.dtype)

    return kernel


def prepare_params(params, use_bf16_matmul=False):
    """One-time packing (do NOT call per forward).

    Pads all output-feature dims to 128 lanes (zero padding is exact: padded
    columns stay 0 through every layer because gamma/beta pad with 0) and packs
      W  : rows [0:D_in]=w1, [r1:r1+H1]=w2, [r1+r2:r1+r2+H2]=w3, cols padded
      GB : (2, H1p+H2p+Dop) with gamma in row 0, beta in row 1.
    Linear biases are intentionally dropped: BN in training mode subtracts the
    batch mean, which cancels any per-feature constant exactly.
    """
    w1, w2, w3 = params["w1"], params["w2"], params["w3"]
    D_in, H1 = w1.shape
    H2 = w2.shape[1]
    D_out = w3.shape[1]
    H1p, H2p, Dop = (_round_up(d, LANE) for d in (H1, H2, D_out))
    Fmax = max(H1p, H2p, Dop)
    r1 = _round_up(D_in, SUBLANE)
    r2, r3 = H1p, H2p  # already multiples of 8

    W = jnp.zeros((r1 + r2 + r3, Fmax), jnp.float32)
    W = W.at[:D_in, :H1].set(w1)
    W = W.at[r1:r1 + H1, :H2].set(w2)
    W = W.at[r1 + r2:r1 + r2 + H2, :D_out].set(w3)
    if use_bf16_matmul:  # v6e/v7x MXU fast path; f32 accumulation kept in-kernel
        W = W.astype(jnp.bfloat16)

    GB = jnp.zeros((2, H1p + H2p + Dop), jnp.float32)
    GB = GB.at[0, :H1].set(params["g1"][0])
    GB = GB.at[1, :H1].set(params["be1"][0])
    GB = GB.at[0, H1p:H1p + H2].set(params["g2"][0])
    GB = GB.at[1, H1p:H1p + H2].set(params["be2"][0])
    GB = GB.at[0, H1p + H2p:H1p + H2p + D_out].set(params["g3"][0])
    GB = GB.at[1, H1p + H2p:H1p + H2p + D_out].set(params["be3"][0])

    meta = dict(D_in=D_in, D_out=D_out, H1p=H1p, H2p=H2p, Dop=Dop, r1=r1, r2=r2)
    return {"W": W, "GB": GB, "meta": meta}


def nn_forward(x, packed):
    """x: (N, D_in) float32 (unpadded). packed: output of prepare_params."""
    m = packed["meta"]
    N, D_in = x.shape
    assert D_in == m["D_in"], "input feature dim mismatch"
    H1p, H2p, Dop = m["H1p"], m["H2p"], m["Dop"]

    kernel = _build_kernel(N, D_in, H1p, H2p, Dop, m["r1"], m["r2"])

    # Size scoped VMEM from the actual footprint (all-resident design), with 2x
    # margin, clamped to a cap that is safe on every generation (v7x has 64 MiB).
    w_bytes = packed["W"].size * jnp.dtype(packed["W"].dtype).itemsize
    est_bytes = (x.size * 4 + w_bytes + packed["GB"].size * 4
                 + N * Dop * 4 + 3 * N * max(H1p, H2p, Dop) * 4)
    vmem_limit = int(min(max(2 * est_bytes, 8 << 20), 64 << 20))

    vmem_spec = pl.BlockSpec(memory_space=pltpu.VMEM)  # full-array VMEM residency
    out = pl.pallas_call(
        kernel,
        out_shape=jax.ShapeDtypeStruct((N, Dop), jnp.float32),
        in_specs=[vmem_spec, vmem_spec, vmem_spec],
        out_specs=vmem_spec,
        compiler_params=pltpu.CompilerParams(vmem_limit_bytes=vmem_limit),
    )(x, packed["W"], packed["GB"])
    return out[:, :m["D_out"]]


def init_params(key, D_in, H1, H2, D_out):
    """Deterministic synthetic parameters (PyTorch-style init).

    Weights stored as (F_in, F_out) = W.T relative to PyTorch's (out, in); biases
    and BN affine params are (1, F) rows. Biases are kept for the reference only.
    """
    ks = jax.random.split(key, 6)

    def lin(kw, kb, fin, fout):
        bound = 1.0 / jnp.sqrt(jnp.float32(fin))
        w = jax.random.uniform(kw, (fin, fout), jnp.float32, -bound, bound)
        b = jax.random.uniform(kb, (1, fout), jnp.float32, -bound, bound)
        return w, b

    w1, b1 = lin(ks[0], ks[1], D_in, H1)
    w2, b2 = lin(ks[2], ks[3], H1, H2)
    w3, b3 = lin(ks[4], ks[5], H2, D_out)
    return {
        "w1": w1, "b1": b1, "g1": jnp.ones((1, H1), jnp.float32), "be1": jnp.zeros((1, H1), jnp.float32),
        "w2": w2, "b2": b2, "g2": jnp.ones((1, H2), jnp.float32), "be2": jnp.zeros((1, H2), jnp.float32),
        "w3": w3, "b3": b3, "g3": jnp.ones((1, D_out), jnp.float32), "be3": jnp.zeros((1, D_out), jnp.float32),
    }


def nn_forward_ref(x, p):
    """Pure-JAX reference matching the PyTorch module (includes linear biases)."""
    def layer(h, w, b, g, be):
        z = h @ w + b
        mu = z.mean(0, keepdims=True)
        v = ((z - mu) ** 2).mean(0, keepdims=True)
        return jnp.maximum((z - mu) / jnp.sqrt(v + BN_EPS) * g + be, 0.0)
    h = layer(x, p["w1"], p["b1"], p["g1"], p["be1"])
    h = layer(h, p["w2"], p["b2"], p["g2"], p["be2"])
    return layer(h, p["w3"], p["b3"], p["g3"], p["be3"])


if __name__ == "__main__":
    N, D_in, H1, H2, D_out = 8, 32, 64, 64, 32

    key = jax.random.PRNGKey(0)
    kx, kp = jax.random.split(key)
    x = jax.random.normal(kx, (N, D_in), jnp.float32)
    params = init_params(kp, D_in, H1, H2, D_out)

    packed = prepare_params(params)          # one-time pad + pack (not per call)
    out = jax.block_until_ready(nn_forward(x, packed))

    ref = nn_forward_ref(x, params)
    assert out.shape == (N, D_out)
    assert jnp.allclose(out, ref, atol=1e-4, rtol=1e-4), "mismatch vs JAX reference"

    print("KERNEL_OK")
</pallas_src>

<mosaic_0001>
module attributes {stable_mosaic.version = 11 : i64} {
  func.func @kernel(%arg0: memref<8x32xf32, #tpu.memory_space<vmem>>, %arg1: memref<288x128xf32, #tpu.memory_space<vmem>>, %arg2: memref<2x384xf32, #tpu.memory_space<vmem>>, %arg3: memref<8x128xf32, #tpu.memory_space<vmem>>) attributes {dimension_semantics = [], scalar_prefetch = 0 : i64, scratch_operands = 0 : i64, tpu.core_type = #tpu.core_type<tc>} {
    %c0 = arith.constant 0 : index
    %c0_0 = arith.constant 0 : index
    %0 = vector.load %arg0[%c0, %c0_0] : memref<8x32xf32, #tpu.memory_space<vmem>>, vector<8x32xf32>
    %c0_1 = arith.constant 0 : index
    %c0_2 = arith.constant 0 : index
    %1 = vector.load %arg1[%c0_1, %c0_2] : memref<288x128xf32, #tpu.memory_space<vmem>>, vector<32x128xf32>
    %c32 = arith.constant 32 : index
    %c0_3 = arith.constant 0 : index
    %2 = vector.load %arg1[%c32, %c0_3] : memref<288x128xf32, #tpu.memory_space<vmem>>, vector<128x128xf32>
    %c160 = arith.constant 160 : index
    %c0_4 = arith.constant 0 : index
    %3 = vector.load %arg1[%c160, %c0_4] : memref<288x128xf32, #tpu.memory_space<vmem>>, vector<128x128xf32>
    %c0_5 = arith.constant 0 : index
    %c0_6 = arith.constant 0 : index
    %4 = vector.load %arg2[%c0_5, %c0_6] : memref<2x384xf32, #tpu.memory_space<vmem>>, vector<2x128xf32>
    %c0_7 = arith.constant 0 : index
    %c128 = arith.constant 128 : index
    %5 = vector.load %arg2[%c0_7, %c128] : memref<2x384xf32, #tpu.memory_space<vmem>>, vector<2x128xf32>
    %c0_8 = arith.constant 0 : index
    %c256 = arith.constant 256 : index
    %6 = vector.load %arg2[%c0_8, %c256] : memref<2x384xf32, #tpu.memory_space<vmem>>, vector<2x128xf32>
    %cst = arith.constant dense<0.000000e+00> : vector<32xf32>
    %7 = vector.multi_reduction <add>, %0, %cst [0] : vector<8x32xf32> to vector<32xf32>
    %8 = vector.shape_cast %7 : vector<32xf32> to vector<1x32xf32>
    %cst_9 = arith.constant dense<0.000000e+00> : vector<8x128xf32>
    %9 = tpu.matmul %0, %1, %cst_9 {dimension_numbers = #tpu.dot_dimension_numbers<[1], [0], [0], [1], [0, 0, 1, 1], [], []>} : vector<8x32xf32>, vector<32x128xf32>, vector<8x128xf32> -> vector<8x128xf32>
    %cst_10 = arith.constant dense<0.000000e+00> : vector<1x128xf32>
    %10 = tpu.matmul %8, %1, %cst_10 {dimension_numbers = #tpu.dot_dimension_numbers<[1], [0], [0], [1], [0, 0, 1, 1], [], []>} : vector<1x32xf32>, vector<32x128xf32>, vector<1x128xf32> -> vector<1x128xf32>
    %cst_11 = arith.constant 1.250000e-01 : f32
    %11 = vector.broadcast %cst_11 : f32 to vector<1x128xf32>
    %12 = arith.mulf %10, %11 : vector<1x128xf32>
    %13 = vector.broadcast %12 : vector<1x128xf32> to vector<8x128xf32>
    %14 = arith.subf %9, %13 : vector<8x128xf32>
    %15 = arith.mulf %14, %14 : vector<8x128xf32>
    %cst_12 = arith.constant dense<0.000000e+00> : vector<128xf32>
    %16 = vector.multi_reduction <add>, %15, %cst_12 [0] : vector<8x128xf32> to vector<128xf32>
    %17 = vector.shape_cast %16 : vector<128xf32> to vector<1x128xf32>
    %cst_13 = arith.constant 1.250000e-01 : f32
    %18 = vector.broadcast %cst_13 : f32 to vector<1x128xf32>
    %19 = arith.mulf %17, %18 : vector<1x128xf32>
    %20 = vector.extract_strided_slice %4 {offsets = [0, 0], sizes = [1, 128], strides = [1, 1]} : vector<2x128xf32> to vector<1x128xf32>
    %cst_14 = arith.constant 9.99999974E-6 : f32
    %21 = vector.broadcast %cst_14 : f32 to vector<1x128xf32>
    %22 = arith.addf %19, %21 : vector<1x128xf32>
    %23 = math.rsqrt %22 : vector<1x128xf32>
    %24 = arith.mulf %20, %23 : vector<1x128xf32>
    %25 = vector.broadcast %24 : vector<1x128xf32> to vector<8x128xf32>
    %26 = arith.mulf %14, %25 : vector<8x128xf32>
    %27 = vector.extract_strided_slice %4 {offsets = [1, 0], sizes = [1, 128], strides = [1, 1]} : vector<2x128xf32> to vector<1x128xf32>
    %28 = vector.broadcast %27 : vector<1x128xf32> to vector<8x128xf32>
    %29 = arith.addf %26, %28 : vector<8x128xf32>
    %cst_15 = arith.constant 0.000000e+00 : f32
    %30 = vector.broadcast %cst_15 : f32 to vector<8x128xf32>
    %31 = arith.maximumf %29, %30 : vector<8x128xf32>
    %cst_16 = arith.constant dense<0.000000e+00> : vector<128xf32>
    %32 = vector.multi_reduction <add>, %31, %cst_16 [0] : vector<8x128xf32> to vector<128xf32>
    %33 = vector.shape_cast %32 : vector<128xf32> to vector<1x128xf32>
    %cst_17 = arith.constant dense<0.000000e+00> : vector<8x128xf32>
    %34 = tpu.matmul %31, %2, %cst_17 {dimension_numbers = #tpu.dot_dimension_numbers<[1], [0], [0], [1], [0, 0, 1, 1], [], []>} : vector<8x128xf32>, vector<128x128xf32>, vector<8x128xf32> -> vector<8x128xf32>
    %cst_18 = arith.constant dense<0.000000e+00> : vector<1x128xf32>
    %35 = tpu.matmul %33, %2, %cst_18 {dimension_numbers = #tpu.dot_dimension_numbers<[1], [0], [0], [1], [0, 0, 1, 1], [], []>} : vector<1x128xf32>, vector<128x128xf32>, vector<1x128xf32> -> vector<1x128xf32>
    %cst_19 = arith.constant 1.250000e-01 : f32
    %36 = vector.broadcast %cst_19 : f32 to vector<1x128xf32>
    %37 = arith.mulf %35, %36 : vector<1x128xf32>
    %38 = vector.broadcast %37 : vector<1x128xf32> to vector<8x128xf32>
    %39 = arith.subf %34, %38 : vector<8x128xf32>
    %40 = arith.mulf %39, %39 : vector<8x128xf32>
    %cst_20 = arith.constant dense<0.000000e+00> : vector<128xf32>
    %41 = vector.multi_reduction <add>, %40, %cst_20 [0] : vector<8x128xf32> to vector<128xf32>
    %42 = vector.shape_cast %41 : vector<128xf32> to vector<1x128xf32>
    %cst_21 = arith.constant 1.250000e-01 : f32
    %43 = vector.broadcast %cst_21 : f32 to vector<1x128xf32>
    %44 = arith.mulf %42, %43 : vector<1x128xf32>
    %45 = vector.extract_strided_slice %5 {offsets = [0, 0], sizes = [1, 128], strides = [1, 1]} : vector<2x128xf32> to vector<1x128xf32>
    %cst_22 = arith.constant 9.99999974E-6 : f32
    %46 = vector.broadcast %cst_22 : f32 to vector<1x128xf32>
    %47 = arith.addf %44, %46 : vector<1x128xf32>
    %48 = math.rsqrt %47 : vector<1x128xf32>
    %49 = arith.mulf %45, %48 : vector<1x128xf32>
    %50 = vector.broadcast %49 : vector<1x128xf32> to vector<8x128xf32>
    %51 = arith.mulf %39, %50 : vector<8x128xf32>
    %52 = vector.extract_strided_slice %5 {offsets = [1, 0], sizes = [1, 128], strides = [1, 1]} : vector<2x128xf32> to vector<1x128xf32>
    %53 = vector.broadcast %52 : vector<1x128xf32> to vector<8x128xf32>
    %54 = arith.addf %51, %53 : vector<8x128xf32>
    %cst_23 = arith.constant 0.000000e+00 : f32
    %55 = vector.broadcast %cst_23 : f32 to vector<8x128xf32>
    %56 = arith.maximumf %54, %55 : vector<8x128xf32>
    %cst_24 = arith.constant dense<0.000000e+00> : vector<128xf32>
    %57 = vector.multi_reduction <add>, %56, %cst_24 [0] : vector<8x128xf32> to vector<128xf32>
    %58 = vector.shape_cast %57 : vector<128xf32> to vector<1x128xf32>
    %cst_25 = arith.constant dense<0.000000e+00> : vector<8x128xf32>
    %59 = tpu.matmul %56, %3, %cst_25 {dimension_numbers = #tpu.dot_dimension_numbers<[1], [0], [0], [1], [0, 0, 1, 1], [], []>} : vector<8x128xf32>, vector<128x128xf32>, vector<8x128xf32> -> vector<8x128xf32>
    %cst_26 = arith.constant dense<0.000000e+00> : vector<1x128xf32>
    %60 = tpu.matmul %58, %3, %cst_26 {dimension_numbers = #tpu.dot_dimension_numbers<[1], [0], [0], [1], [0, 0, 1, 1], [], []>} : vector<1x128xf32>, vector<128x128xf32>, vector<1x128xf32> -> vector<1x128xf32>
    %cst_27 = arith.constant 1.250000e-01 : f32
    %61 = vector.broadcast %cst_27 : f32 to vector<1x128xf32>
    %62 = arith.mulf %60, %61 : vector<1x128xf32>
    %63 = vector.broadcast %62 : vector<1x128xf32> to vector<8x128xf32>
    %64 = arith.subf %59, %63 : vector<8x128xf32>
    %65 = arith.mulf %64, %64 : vector<8x128xf32>
    %cst_28 = arith.constant dense<0.000000e+00> : vector<128xf32>
    %66 = vector.multi_reduction <add>, %65, %cst_28 [0] : vector<8x128xf32> to vector<128xf32>
    %67 = vector.shape_cast %66 : vector<128xf32> to vector<1x128xf32>
    %cst_29 = arith.constant 1.250000e-01 : f32
    %68 = vector.broadcast %cst_29 : f32 to vector<1x128xf32>
    %69 = arith.mulf %67, %68 : vector<1x128xf32>
    %70 = vector.extract_strided_slice %6 {offsets = [0, 0], sizes = [1, 128], strides = [1, 1]} : vector<2x128xf32> to vector<1x128xf32>
    %cst_30 = arith.constant 9.99999974E-6 : f32
    %71 = vector.broadcast %cst_30 : f32 to vector<1x128xf32>
    %72 = arith.addf %69, %71 : vector<1x128xf32>
    %73 = math.rsqrt %72 : vector<1x128xf32>
    %74 = arith.mulf %70, %73 : vector<1x128xf32>
    %75 = vector.broadcast %74 : vector<1x128xf32> to vector<8x128xf32>
    %76 = arith.mulf %64, %75 : vector<8x128xf32>
    %77 = vector.extract_strided_slice %6 {offsets = [1, 0], sizes = [1, 128], strides = [1, 1]} : vector<2x128xf32> to vector<1x128xf32>
    %78 = vector.broadcast %77 : vector<1x128xf32> to vector<8x128xf32>
    %79 = arith.addf %76, %78 : vector<8x128xf32>
    %cst_31 = arith.constant 0.000000e+00 : f32
    %80 = vector.broadcast %cst_31 : f32 to vector<8x128xf32>
    %81 = arith.maximumf %79, %80 : vector<8x128xf32>
    %c0_32 = arith.constant 0 : index
    %c0_33 = arith.constant 0 : index
    %82 = vector.load %arg3[%c0_32, %c0_33] : memref<8x128xf32, #tpu.memory_space<vmem>>, vector<8x128xf32>
    tpu.vector_store %arg3[%c0_32, %c0_33], %81 {strides = array<i32>} : memref<8x128xf32, #tpu.memory_space<vmem>>, vector<8x128xf32>,
    return
  }
}

</mosaic_0001>

<bundles_post_ra>
// kernel: tpu_custom_call.1
= control target key start
LH: loop header
LB: loop body
LE: loop exit
PB: predicated region body
PF: predicated region fallthrough
CT: control target
= control target key end

     0   :  { %8 = vsyncpa [#allocation3], 0  ;;  %s1208_s0 = inlined_call_operand.hbm [shape: f32[8,32], index: 0, kind: input, shape index: {}]   ;;  %s1209_s1 = inlined_call_operand.hbm [shape: f32[288,128], index: 1, kind: input, shape index: {}]   ;;  %s1210_s2 = inlined_call_operand.vmem [shape: f32[2,384], index: 2, kind: input, shape index: {}]   ;;  %s1211_s3 = inlined_call_operand.hbm [shape: f32[8,128], index: 3, kind: output, shape index: {}]  }
   0x1   :  { %9 = vsyncpa [#allocation6], 0 }
   0x2   :  { %10 = vsyncpa [#allocation4], 0  ;;  %s1064_s12 = smov [#allocation2]   ;;  %s1065_s14 = smov [#allocation5]  }
   0x3   :  { %s17_s13 = sshll.u32 %s1064_s12, 4  ;;  %s26_s15 = sshll.u32 %s1065_s14, 4  ;;  %s18_s13 = int_to_ptr.vmem [resolvable:$true] %s17_s13  ;;  %s1092_s15 = int_to_ptr.vmem [resolvable:$true] %s26_s15 }
   0x4   :  { %s992_s18 = scalar_lea.hbm %s1208_s0, 128 }
   0x5   :  { %p993_p0 = scmp.ne.s32.totalorder %s1208_s0, %s992_s18  ;;  %p996_p1 = scmp.lt.u32.totalorder %s992_s18, %s1208_s0 }
   0x7   :  { %p998_p2 = pnand %p996_p1, %p993_p0 }
   0x9   :  { %1001 = shalt.err (!%p998_p2)
}
   0xa   :  { %s1002_s23 = scalar_lea.vmem %s18_s13, 128  ;;  %p1007_p4 = scmp.lt.s32.totalorder %s18_s13, %s18_s13 }
   0xb   :  { %p1003_p3 = scmp.ne.s32.totalorder %s18_s13, %s1002_s23  ;;  %p1008_p5 = scmp.lt.s32.totalorder %s1002_s23, %s1002_s23 }
   0xd   :  { %p1009_p6 = por %p1008_p5, %p1007_p4 }
   0xf   :  { %p1010_p7 = pnand %p1009_p6, %p1003_p3 }
  0x11   :  { %1013 = shalt.err (!%p1010_p7)
}
  0x12   :  { %20 = dma.hbm_to_vmem [thread:$0]  %s1208_s0, 128, %s18_s13, [#allocation3]  }
  0x13   :  { %s1014_s28 = scalar_lea.hbm %s1209_s1, 4608 }
  0x14   :  { %p1015_p8 = scmp.ne.s32.totalorder %s1209_s1, %s1014_s28  ;;  %p1018_p9 = scmp.lt.u32.totalorder %s1014_s28, %s1209_s1 }
  0x16   :  { %p1020_p10 = pnand %p1018_p9, %p1015_p8 }
  0x18   :  { %1023 = shalt.err (!%p1020_p10)
}
  0x19   :  { %s1024_s6 = scalar_lea.vmem %s1092_s15, 4608  ;;  %p1029_p12 = scmp.lt.s32.totalorder %s1092_s15, %s1092_s15 }
  0x1a   :  { %p1025_p11 = scmp.ne.s32.totalorder %s1092_s15, %s1024_s6  ;;  %p1030_p13 = scmp.lt.s32.totalorder %s1024_s6, %s1024_s6 }
  0x1c   :  { %p1031_p0 = por %p1030_p13, %p1029_p12 }
  0x1e   :  { %p1032_p1 = pnand %p1031_p0, %p1025_p11 }
  0x20   :  { %1035 = shalt.err (!%p1032_p1)
}
  0x21   :  { %s1066_s0 = smov 128   ;;  %s1067_s7 = smov 8  }
  0x22   :  { %32 = dma.hbm_to_vmem [thread:$0]  %s1209_s1, 4608, %s1092_s15, [#allocation6], %s1066_s0, %s1066_s0, %s1067_s7  }
  0x23   :  { %1058 = dma.done.wait [#allocation3], 128  }
  0x24   :  { %1059 = vsyncadd [#allocation3], 4294967168 }
  0x25   :  { %1060 = dma.done.wait [#allocation6], 4608  }
  0x26   :  { %1061 = vsyncadd [#allocation6], 4294962688  ;;  %v1068_v0 = vmov 0.0|0.0   ;;  %vm1069_vm0 = vmmov 0   ;;  %v1070_v1 = vmov 0.0   ;;  %vm81_vm1 = vcmask 261120  }
  0x27   :  { %876 = vmatprep.subr.bf16.mxu1 %v1068_v0  ;;  %870 = vmatprep.subr.bf16.mxu0 %v1068_v0  ;;  %v42_v2 = vld [vmem:[#allocation5] sm:$0xff]  ;;  %v43_v3 = vld [vmem:[#allocation5 + $0x8] sm:$0xff]  ;;  %v44_v4 = vld [vmem:[#allocation5 + $0x10] sm:$0xff]  ;;  %v236_v40 = vlaneseq  ;;  %s1071_s15 = smov [#allocation7]  }
  0x28   :  { %727 = vmatprep.mubr.msk.f32.mxu1 %vm1069_vm0, %v1070_v1  ;;  %716 = vmatprep.mubr.msk.f32.mxu0 %vm1069_vm0, %v1070_v1  ;;  %v871_v5 = vpack.c.bf16 %v43_v3, %v42_v2  ;;  %v45_v6 = vld [vmem:[#allocation5 + $0x18] sm:$0xff]  ;;  %v46_v16 = vld [vmem:[#allocation5 + $0x20] sm:$0xff]  ;;  %v47_v17 = vld [vmem:[#allocation5 + $0x28] sm:$0xff]  ;;  %s618_s16 = sshll.u32 %s1071_s15, 4  ;;  %s619_s16 = int_to_ptr.vmem [resolvable:$true] %s618_s16 }
  0x29   :  { %v41_v7 = vld [vmem:[#allocation2] sm:$0xff]  ;;  %v874_v9 = vpack.c.bf16 %v45_v6, %v44_v4  ;;  %v883_v18 = vpack.c.bf16 %v47_v17, %v46_v16  ;;  %v48_v19 = vld [vmem:[#allocation5 + $0x30] sm:$0xff]  ;;  %v50_v22 = vld [vmem:[#allocation5 + $0x40] sm:$0xff]  ;;  %v237_v42 = vshrl.u32 %v236_v40, 7  ;;  %s1036_s17 = scalar_lea.vmem %s619_s16, 128  ;;  %p1041_p3 = scmp.lt.s32.totalorder %s619_s16, %s619_s16 }
  0x2a   :  { %v82_v8 = vsel %vm81_vm1, %v41_v7, 0.0  ;;  %878 = vmatpush3.bf16.msra.mxu1 %v871_v5  ;;  %872 = vmatpush3.bf16.msra.mxu0 %v871_v5  ;;  %v49_v20 = vld [vmem:[#allocation5 + $0x38] sm:$0xff]  ;;  %v51_v23 = vld [vmem:[#allocation5 + $0x48] sm:$0xff]  ;;  %v52_v25 = vld [vmem:[#allocation5 + $0x50] sm:$0xff]  ;;  %p1037_p2 = scmp.ne.s32.totalorder %s619_s16, %s1036_s17  ;;  %p1042_p4 = scmp.lt.s32.totalorder %s1036_s17, %s1036_s17 }
  0x2b   :  { %v83_v10 = vrot.slane %v82_v8, 4  ;;  %879 = vmatprep.subr.bf16.mxu1 %v1068_v0  ;;  %873 = vmatprep.subr.bf16.mxu0 %v1068_v0  ;;  %v886_v21 = vpack.c.bf16 %v49_v20, %v48_v19  ;;  %v889_v24 = vpack.c.bf16 %v51_v23, %v50_v22  ;;  %v53_v26 = vld [vmem:[#allocation5 + $0x58] sm:$0xff]  ;;  %v54_v28 = vld [vmem:[#allocation5 + $0x60] sm:$0xff]  ;;  %v55_v29 = vld [vmem:[#allocation5 + $0x68] sm:$0xff]  ;;  %v1156_v44 = vsub.s32 0, %v237_v42 }
  0x2c   :  { %v892_v27 = vpack.c.bf16 %v53_v26, %v52_v25  ;;  %v895_v30 = vpack.c.bf16 %v55_v29, %v54_v28  ;;  %v56_v31 = vld [vmem:[#allocation5 + $0x70] sm:$0xff]  ;;  %v57_v32 = vld [vmem:[#allocation5 + $0x78] sm:$0xff]  ;;  %v58_v34 = vld [vmem:[#allocation5 + $0x80] sm:$0xff]  ;;  %v1162_v60 = vsub.s32 1, %v237_v42  ;;  %p1043_p5 = por %p1042_p4, %p1041_p3 }
  0x2d   :  { %v84_v11 = vadd.f32 %v83_v10, %v82_v8  ;;  %v898_v33 = vpack.c.bf16 %v57_v32, %v56_v31  ;;  %v59_v35 = vld [vmem:[#allocation5 + $0x88] sm:$0xff]  ;;  %v60_v37 = vld [vmem:[#allocation5 + $0x90] sm:$0xff]  ;;  %v61_v38 = vld [vmem:[#allocation5 + $0x98] sm:$0xff] }
  0x2e   :  { %881 = vmatpush3.bf16.msra.mxu1 %v874_v9  ;;  %875 = vmatpush3.bf16.msra.mxu0 %v874_v9  ;;  %v901_v36 = vpack.c.bf16 %v59_v35, %v58_v34  ;;  %v904_v39 = vpack.c.bf16 %v61_v38, %v60_v37  ;;  %v78_v59 = vld [vmem:[%s1210_s2] sm:$0x3]  ;;  %v67_v19 = vld [vmem:[#allocation5 + $0xc8] sm:$0xff]  ;;  %v68_v20 = vld [vmem:[#allocation5 + $0xd0] sm:$0xff]  ;;  %p1044_p6 = pnand %p1043_p5, %p1037_p2 }
  0x2f   :  { %v85_v12 = vrot.slane %v84_v11, 2  ;;  %882 = vmatprep.subr.bf16.mxu0 %v1068_v0  ;;  %906 = vmatprep.subr.bf16.mxu1 %v1068_v0  ;;  %v260_v2 = vrot.slane %v78_v59, %v1162_v60  ;;  %v65_v16 = vld [vmem:[#allocation5 + $0xb8] sm:$0xff]  ;;  %v70_v23 = vld [vmem:[#allocation5 + $0xe0] sm:$0xff]  ;;  %v72_v26 = vld [vmem:[#allocation5 + $0xf0] sm:$0xff] }
  0x30   :  { %v74_v29 = vld [vmem:[#allocation5 + $0x100] sm:$0xff]  ;;  %v76_v32 = vld [vmem:[#allocation5 + $0x110] sm:$0xff] }
  0x31   :  { %v86_v13 = vadd.f32 %v85_v12, %v84_v11  ;;  %717 = vmatmul.mubr.msk.f32.vlgmr.msra.gmra.mrb[0].mxu0 %vm81_vm1, %v41_v7  ;;  %v62_v12 = vld [vmem:[#allocation5 + $0xa0] sm:$0xff] }
  0x32   :  { %762 = vmatprep.mubr.msk.f32.mxu0 %vm1069_vm0, %v1070_v1  ;;  %884 = vmatpush3.bf16.msra.mxu0 %v883_v18 }
  0x33   :  { %v87_v14 = vrot.slane %v86_v13, 1  ;;  %885 = vmatprep.subr.bf16.mxu0 %v1068_v0 }
  0x35   :  { %v88_v15 = vadd.f32 %v87_v14, %v86_v13  ;;  %v63_v13 = vld [vmem:[#allocation5 + $0xa8] sm:$0xff] }
  0x36   :  { %887 = vmatpush3.bf16.msra.mxu0 %v886_v21  ;;  %v931_v14 = vpack.c.bf16 %v63_v13, %v62_v12 }
  0x37   :  { %728 = vmatmul.mubr.msk.f32.vlgmr.msra.gmra.mrb[0].mxu1 %vm81_vm1, %v88_v15  ;;  %888 = vmatprep.subr.bf16.mxu0 %v1068_v0  ;;  %v64_v15 = vld [vmem:[#allocation5 + $0xb0] sm:$0xff] }
  0x38   :  { %797 = vmatprep.mubr.msk.f32.mxu1 %vm1069_vm0, %v1070_v1  ;;  %908 = vmatpush3.bf16.msra.mxu1 %v883_v18  ;;  %v934_v17 = vpack.c.bf16 %v65_v16, %v64_v15  ;;  %v66_v18 = vld [vmem:[#allocation5 + $0xc0] sm:$0xff] }
  0x39   :  { %909 = vmatprep.subr.bf16.mxu1 %v1068_v0 }
  0x3a   :  { %890 = vmatpush3.bf16.msra.mxu0 %v889_v24 }
  0x3b   :  { %891 = vmatprep.subr.bf16.mxu0 %v1068_v0 }
  0x3c   :  { %911 = vmatpush3.bf16.msra.mxu1 %v886_v21  ;;  %v69_v21 = vld [vmem:[#allocation5 + $0xd8] sm:$0xff] }
  0x3d   :  { %912 = vmatprep.subr.bf16.mxu1 %v1068_v0  ;;  %v940_v22 = vpack.c.bf16 %v69_v21, %v68_v20 }
  0x3e   :  { %893 = vmatpush3.bf16.msra.mxu0 %v892_v27 }
  0x3f   :  { %894 = vmatprep.subr.bf16.mxu0 %v1068_v0 }
  0x40   :  { %914 = vmatpush3.bf16.msra.mxu1 %v889_v24  ;;  %v71_v24 = vld [vmem:[#allocation5 + $0xe8] sm:$0xff] }
  0x41   :  { %915 = vmatprep.subr.bf16.mxu1 %v1068_v0  ;;  %v943_v25 = vpack.c.bf16 %v71_v24, %v70_v23 }
  0x42   :  { %896 = vmatpush3.bf16.msra.mxu0 %v895_v30 }
  0x43   :  { %897 = vmatprep.subr.bf16.mxu0 %v1068_v0 }
  0x44   :  { %917 = vmatpush3.bf16.msra.mxu1 %v892_v27  ;;  %v73_v27 = vld [vmem:[#allocation5 + $0xf8] sm:$0xff] }
  0x45   :  { %918 = vmatprep.subr.bf16.mxu1 %v1068_v0  ;;  %v946_v28 = vpack.c.bf16 %v73_v27, %v72_v26 }
  0x46   :  { %899 = vmatpush3.bf16.msra.mxu0 %v898_v33 }
  0x47   :  { %900 = vmatprep.subr.bf16.mxu0 %v1068_v0 }
  0x48   :  { %920 = vmatpush3.bf16.msra.mxu1 %v895_v30  ;;  %v75_v30 = vld [vmem:[#allocation5 + $0x108] sm:$0xff] }
  0x49   :  { %921 = vmatprep.subr.bf16.mxu1 %v1068_v0  ;;  %v949_v31 = vpack.c.bf16 %v75_v30, %v74_v29 }
  0x4a   :  { %902 = vmatpush3.bf16.msra.mxu0 %v901_v36 }
  0x4b   :  { %903 = vmatprep.subr.bf16.mxu0 %v1068_v0 }
  0x4c   :  { %923 = vmatpush3.bf16.msra.mxu1 %v898_v33  ;;  %v77_v33 = vld [vmem:[#allocation5 + $0x118] sm:$0xff] }
  0x4d   :  { %924 = vmatprep.subr.bf16.mxu1 %v1068_v0  ;;  %v952_v34 = vpack.c.bf16 %v77_v33, %v76_v32 }
  0x4e   :  { %905 = vmatpush3.bf16.msra.mxu0 %v904_v39 }
  0x4f   :  { %930 = vmatprep.subr.bf16.mxu0 %v1068_v0 }
  0x50   :  { %926 = vmatpush3.bf16.msra.mxu1 %v901_v36 }
  0x51   :  { %927 = vmatprep.subr.bf16.mxu1 %v1068_v0 }
  0x54   :  { %929 = vmatpush3.bf16.msra.mxu1 %v904_v39 }
  0x55   :  { %954 = vmatprep.subr.bf16.mxu1 %v1068_v0 }
 0x104   :  { %v158_v41 = vpop.f32.mrb[0].mxu0 }
 0x105   :  { %v718_v43 = vpop.f32.mrb[1].mxu0 }
 0x10a   :  { %v231_v45 = vpop.f32.mrb[0].mxu1 }
 0x10b   :  { %v235_v46 = vmul.f32 0.125, %v231_v45  ;;  %v729_v47 = vpop.f32.mrb[1].mxu1 }
 0x10d   :  { %v239_v48 = vrot.slane %v235_v46, %v1156_v44 }
 0x10f   :  { %v240_v49 = vsub.f32 %v158_v41, %v239_v48 }
 0x111   :  { %v241_v50 = vmul.f32 %v240_v49, %v240_v49 }
 0x113   :  { %v242_v51 = vrot.slane %v241_v50, 4 }
 0x115   :  { %v243_v52 = vadd.f32 %v242_v51, %v241_v50  ;;  %v79_v51 = vld [vmem:[%s1210_s2 + $0x2] sm:$0x3] }
 0x117   :  { %v244_v53 = vrot.slane %v243_v52, 2 }
 0x119   :  { %v245_v54 = vadd.f32 %v244_v53, %v243_v52 }
 0x11b   :  { %v246_v55 = vrot.slane %v245_v54, 1 }
 0x11d   :  { %v247_v56 = vadd.f32 %v246_v55, %v245_v54  ;;  %v434_v55 = vrot.slane %v79_v51, %v1162_v60 }
 0x11f   :  { %v248_v57 = vmul.f32 0.125, %v247_v56 }
 0x121   :  { %v249_v58 = vadd.f32 1e-05, %v248_v57 }
 0x123   :  { %986 = vrsqrt.f32 %v249_v58 }
 0x12d   :  { %v987_v61 = vpop.eup %986 }
 0x12e   :  { %v251_v62 = vmul.f32 %v987_v61, %v78_v59 }
 0x130   :  { %v255_v63 = vrot.slane %v251_v62, %v1156_v44 }
 0x132   :  { %v256_v3 = vmul.f32 %v255_v63, %v240_v49 }
 0x134   :  { %v261_v4 = vadd.f32 %v260_v2, %v256_v3 }
 0x136   :  { %v262_v5 = vmax.f32 %v261_v4, 0.0 }
 0x138   :  { %v263_v6 = vrot.slane %v262_v5, 4  ;;  %763 = vmatmul.mubr.f32.vlgmr.msra.gmra.mrb[2].mxu0 %v262_v5 }
 0x139   :  { %832 = vmatprep.mubr.msk.f32.mxu0 %vm1069_vm0, %v1070_v1  ;;  %932 = vmatpush3.bf16.msra.mxu0 %v931_v14 }
 0x13a   :  { %v264_v7 = vadd.f32 %v263_v6, %v262_v5  ;;  %933 = vmatprep.subr.bf16.mxu0 %v1068_v0 }
 0x13c   :  { %v265_v8 = vrot.slane %v264_v7, 2 }
 0x13d   :  { %935 = vmatpush3.bf16.msra.mxu0 %v934_v17 }
 0x13e   :  { %v266_v9 = vadd.f32 %v265_v8, %v264_v7  ;;  %936 = vmatprep.subr.bf16.mxu0 %v1068_v0 }
 0x140   :  { %v267_v10 = vrot.slane %v266_v9, 1 }
 0x142   :  { %v268_v11 = vadd.f32 %v267_v10, %v266_v9 }
 0x144   :  { %798 = vmatmul.mubr.f32.vlgmr.msra.gmra.mrb[2].mxu1 %v268_v11 }
 0x145   :  { %867 = vmatprep.mubr.msk.f32.mxu1 %vm1069_vm0, %v1070_v1  ;;  %956 = vmatpush3.bf16.msra.mxu1 %v931_v14  ;;  %v937_v1 = vpack.c.bf16 %v67_v19, %v66_v18 }
 0x146   :  { %957 = vmatprep.subr.bf16.mxu1 %v1068_v0 }
 0x147   :  { %938 = vmatpush3.bf16.msra.mxu0 %v937_v1 }
 0x148   :  { %939 = vmatprep.subr.bf16.mxu0 %v1068_v0 }
 0x149   :  { %959 = vmatpush3.bf16.msra.mxu1 %v934_v17 }
 0x14a   :  { %960 = vmatprep.subr.bf16.mxu1 %v1068_v0 }
 0x14b   :  { %941 = vmatpush3.bf16.msra.mxu0 %v940_v22 }
 0x14c   :  { %942 = vmatprep.subr.bf16.mxu0 %v1068_v0 }
 0x14d   :  { %962 = vmatpush3.bf16.msra.mxu1 %v937_v1  ;;  %v80_v1 = vld [vmem:[%s1210_s2 + $0x4] sm:$0x3] }
 0x14e   :  { %963 = vmatprep.subr.bf16.mxu1 %v1068_v0  ;;  %v608_v23 = vrot.slane %v80_v1, %v1162_v60 }
 0x14f   :  { %944 = vmatpush3.bf16.msra.mxu0 %v943_v25 }
 0x150   :  { %945 = vmatprep.subr.bf16.mxu0 %v1068_v0 }
 0x151   :  { %965 = vmatpush3.bf16.msra.mxu1 %v940_v22 }
 0x152   :  { %966 = vmatprep.subr.bf16.mxu1 %v1068_v0 }
 0x153   :  { %947 = vmatpush3.bf16.msra.mxu0 %v946_v28 }
 0x154   :  { %948 = vmatprep.subr.bf16.mxu0 %v1068_v0 }
 0x155   :  { %968 = vmatpush3.bf16.msra.mxu1 %v943_v25 }
 0x156   :  { %969 = vmatprep.subr.bf16.mxu1 %v1068_v0 }
 0x157   :  { %950 = vmatpush3.bf16.msra.mxu0 %v949_v31 }
 0x158   :  { %951 = vmatprep.subr.bf16.mxu0 %v1068_v0 }
 0x159   :  { %971 = vmatpush3.bf16.msra.mxu1 %v946_v28 }
 0x15a   :  { %972 = vmatprep.subr.bf16.mxu1 %v1068_v0 }
 0x15b   :  { %953 = vmatpush3.bf16.msra.mxu0 %v952_v34 }
 0x15d   :  { %974 = vmatpush3.bf16.msra.mxu1 %v949_v31 }
 0x15e   :  { %975 = vmatprep.subr.bf16.mxu1 %v1068_v0 }
 0x161   :  { %977 = vmatpush3.bf16.msra.mxu1 %v952_v34 }
 0x20b   :  { %v335_v35 = vpop.f32.mrb[2].mxu0 }
 0x20c   :  { %v764_v36 = vpop.f32.mrb[3].mxu0 }
 0x217   :  { %v405_v37 = vpop.f32.mrb[2].mxu1 }
 0x218   :  { %v409_v38 = vmul.f32 0.125, %v405_v37  ;;  %v799_v39 = vpop.f32.mrb[3].mxu1 }
 0x21a   :  { %v413_v40 = vrot.slane %v409_v38, %v1156_v44 }
 0x21c   :  { %v414_v41 = vsub.f32 %v335_v35, %v413_v40 }
 0x21e   :  { %v415_v42 = vmul.f32 %v414_v41, %v414_v41 }
 0x220   :  { %v416_v43 = vrot.slane %v415_v42, 4 }
 0x222   :  { %v417_v45 = vadd.f32 %v416_v43, %v415_v42 }
 0x224   :  { %v418_v46 = vrot.slane %v417_v45, 2 }
 0x226   :  { %v419_v47 = vadd.f32 %v418_v46, %v417_v45 }
 0x228   :  { %v420_v48 = vrot.slane %v419_v47, 1 }
 0x22a   :  { %v421_v49 = vadd.f32 %v420_v48, %v419_v47 }
 0x22c   :  { %v422_v50 = vmul.f32 0.125, %v421_v49 }
 0x22e   :  { %v423_v0 = vadd.f32 1e-05, %v422_v50 }
 0x230   :  { %988 = vrsqrt.f32 %v423_v0 }
 0x23a   :  { %v989_v52 = vpop.eup %988 }
 0x23b   :  { %v425_v53 = vmul.f32 %v989_v52, %v79_v51 }
 0x23d   :  { %v429_v54 = vrot.slane %v425_v53, %v1156_v44 }
 0x23f   :  { %v430_v56 = vmul.f32 %v429_v54, %v414_v41 }
 0x241   :  { %v435_v57 = vadd.f32 %v434_v55, %v430_v56 }
 0x243   :  { %v436_v58 = vmax.f32 %v435_v57, 0.0 }
 0x245   :  { %v437_v59 = vrot.slane %v436_v58, 4  ;;  %833 = vmatmul.mubr.f32.vlgmr.msra.gmra.mrb[4].mxu0 %v436_v58 }
 0x247   :  { %v438_v61 = vadd.f32 %v437_v59, %v436_v58 }
 0x249   :  { %v439_v62 = vrot.slane %v438_v61, 2 }
 0x24b   :  { %v440_v63 = vadd.f32 %v439_v62, %v438_v61 }
 0x24d   :  { %v441_v2 = vrot.slane %v440_v63, 1 }
 0x24f   :  { %v442_v3 = vadd.f32 %v441_v2, %v440_v63 }
 0x251   :  { %868 = vmatmul.mubr.f32.vlgmr.msra.gmra.mrb[4].mxu1 %v442_v3 }
 0x318   :  { %v509_v4 = vpop.f32.mrb[4].mxu0 }
 0x319   :  { %v834_v5 = vpop.f32.mrb[5].mxu0 }
 0x324   :  { %v579_v6 = vpop.f32.mrb[4].mxu1 }
 0x325   :  { %v583_v7 = vmul.f32 0.125, %v579_v6  ;;  %v869_v8 = vpop.f32.mrb[5].mxu1 }
 0x327   :  { %v587_v9 = vrot.slane %v583_v7, %v1156_v44 }
 0x329   :  { %v588_v10 = vsub.f32 %v509_v4, %v587_v9 }
 0x32b   :  { %v589_v11 = vmul.f32 %v588_v10, %v588_v10 }
 0x32d   :  { %v590_v12 = vrot.slane %v589_v11, 4 }
 0x32f   :  { %v591_v13 = vadd.f32 %v590_v12, %v589_v11 }
 0x331   :  { %v592_v14 = vrot.slane %v591_v13, 2 }
 0x333   :  { %v593_v15 = vadd.f32 %v592_v14, %v591_v13 }
 0x335   :  { %v594_v16 = vrot.slane %v593_v15, 1 }
 0x337   :  { %v595_v17 = vadd.f32 %v594_v16, %v593_v15 }
 0x339   :  { %v596_v18 = vmul.f32 0.125, %v595_v17 }
 0x33b   :  { %v597_v19 = vadd.f32 1e-05, %v596_v18 }
 0x33d   :  { %990 = vrsqrt.f32 %v597_v19 }
 0x347   :  { %v991_v20 = vpop.eup %990 }
 0x348   :  { %v599_v21 = vmul.f32 %v991_v20, %v80_v1 }
 0x34a   :  { %v603_v22 = vrot.slane %v599_v21, %v1156_v44 }
 0x34c   :  { %v604_v24 = vmul.f32 %v603_v22, %v588_v10 }
 0x34e   :  { %v609_v25 = vadd.f32 %v608_v23, %v604_v24 }
 0x350   :  { %v610_v26 = vmax.f32 %v609_v25, 0.0 }
 0x352   :  { %611 = vst [vmem:[#allocation7] sm:$0xff] %v610_v26 }
 0x353   :  { %1047 = shalt.err (!%p1044_p6)
}
 0x354   :  { %s1048_s19 = scalar_lea.hbm %s1211_s3, 128 }
 0x355   :  { %p1049_p7 = scmp.ne.s32.totalorder %s1211_s3, %s1048_s19  ;;  %p1052_p8 = scmp.lt.u32.totalorder %s1048_s19, %s1211_s3 }
 0x357   :  { %p1054_p9 = pnand %p1052_p8, %p1049_p7 }
 0x359   :  { %1057 = shalt.err (!%p1054_p9)
}
 0x35a   :  { %621 = dma.vmem_to_hbm [thread:$0]  %s619_s16, 128, %s1211_s3, [#allocation4]  }
 0x35b   :  { %1062 = dma.done.wait [#allocation4], 128  }
 0x35c   :  { %1063 = vsyncadd [#allocation4], 4294967168 }
 0x35d   :  { %625 = vsyncpa [#allocation3], 1 }
 0x35e   :  { %626 = vsyncpa [#allocation6], 1 }
 0x35f   :  { %627 = vsyncpa [#allocation4], 1 }

</bundles_post_ra>
